<compile_context>
chip_gen: v7x
topology: tpu7x:2x2x1
jax: 0.10.0
libtpu: 0.0.40
codegen_flags: <defaults>
</compile_context>

<pallas_src>
import functools

import jax
import jax.numpy as jnp
from jax.experimental import pallas as pl
from jax.experimental.pallas import tpu as pltpu

_LANE = 128
_SUB = 16  # bf16 sublane packing; batch tiles are multiples of this


def _round_up(n, m):
    return (n + m - 1) // m * m


def _cdiv(a, b):
    return -(-a // b)


# ----------------------------- fused Pallas kernel ------------------------------

def _make_mlp_kernel(n_hidden):
    """Fused (Linear -> BN(eval) -> ReLU [-> Dropout=id])*n_hidden -> Linear.

    refs layout: [x, (w, scale_shift) * n_hidden, w_out, b_out, o]
      x           : [tm, k_in]   input dtype (cast to bf16 on the VPU inside the kernel)
      w           : [k,  h]      bf16, output-feature dims padded to 128
      scale_shift : [2,  h]      f32; row 0 = folded BN scale, row 1 = folded bias + BN shift
      b_out       : [1,  outp]   f32
      o           : [tm, outp]   bf16 (lane-dense, unmasked stores)
    """

    def kernel(*refs):
        x_ref = refs[0]
        o_ref = refs[-1]
        h = x_ref[...].astype(jnp.bfloat16)
        idx = 1
        for _ in range(n_hidden):
            w_ref, ss_ref = refs[idx], refs[idx + 1]
            idx += 2
            acc = jnp.dot(h, w_ref[...], preferred_element_type=jnp.float32)
            ss = ss_ref[...]
            y = acc * ss[0:1] + ss[1:2]                    # folded Linear-bias + BatchNorm(eval)
            h = jnp.maximum(y, 0.0).astype(jnp.bfloat16)   # ReLU (Dropout = identity in eval)
        w_ref, b_ref = refs[idx], refs[idx + 1]
        acc = jnp.dot(h, w_ref[...], preferred_element_type=jnp.float32)
        o_ref[...] = (acc + b_ref[...]).astype(o_ref.dtype)

    return kernel


# ------------------------------ parameter handling -------------------------------

def init_mlp_params(key, input_size, hidden_size_list, output_size):
    """Deterministic parameter init matching the PyTorch module's shapes (W kept as [in, out])."""
    params = []
    prev = input_size
    sizes = list(hidden_size_list) + [output_size]
    for i, h in enumerate(sizes):
        key, kw, kb = jax.random.split(key, 3)
        bound = 1.0 / jnp.sqrt(prev)
        w = jax.random.uniform(kw, (prev, h), jnp.float32, -bound, bound)
        b = jax.random.uniform(kb, (h,), jnp.float32, -bound, bound)
        layer = {"w": w, "b": b}
        if i < len(hidden_size_list):
            layer["bn_weight"] = jnp.ones((h,), jnp.float32)
            layer["bn_bias"] = jnp.zeros((h,), jnp.float32)
            layer["bn_mean"] = jnp.zeros((h,), jnp.float32)
            layer["bn_var"] = jnp.ones((h,), jnp.float32)
        params.append(layer)
        prev = h
    return params


def prepare_mlp_params(params, eps=1e-5):
    """Fold BN(eval)+bias into a packed (2, h) scale/shift; pad feature dims to 128; bf16 weights.

    The FIRST layer's K dim stays unpadded so x can be read straight from HBM without a
    wrapper-side pad/cast pass (padded K rows / padded output columns contribute exactly zero).
    """
    n_hidden = len(params) - 1
    hidden = []
    prev_pad = None  # padded width of the previous layer's output
    for i in range(n_hidden):
        p = params[i]
        k, h = p["w"].shape
        kp = prev_pad if prev_pad is not None else k
        hp = _round_up(h, _LANE)
        w = jnp.zeros((kp, hp), jnp.bfloat16).at[:k, :h].set(p["w"].astype(jnp.bfloat16))
        inv_std = 1.0 / jnp.sqrt(p["bn_var"] + eps)
        scale = p["bn_weight"] * inv_std
        shift = (p["b"] - p["bn_mean"]) * scale + p["bn_bias"]
        ss = jnp.zeros((2, hp), jnp.float32).at[0, :h].set(scale).at[1, :h].set(shift)
        hidden.append((w, ss))
        prev_pad = hp
    p = params[-1]
    k, o = p["w"].shape
    kp = prev_pad if prev_pad is not None else k
    op_ = _round_up(o, _LANE)
    w_out = jnp.zeros((kp, op_), jnp.bfloat16).at[:k, :o].set(p["w"].astype(jnp.bfloat16))
    b_out = jnp.zeros((1, op_), jnp.float32).at[0, :o].set(p["b"])
    return {"hidden": hidden, "w_out": w_out, "b_out": b_out}


# ------------------------------ VMEM / tile budgeting ------------------------------

def _vmem_limit_bytes():
    """Generation-aware VMEM cap: ~104 MiB on v5e/v6e (128 MiB physical), ~40 MiB on v7x
    (64 MiB per TensorCore), leaving headroom for compiler-internal scratch."""
    try:
        cap = int(pltpu.get_tpu_info().vmem_capacity_bytes)
    except Exception:
        cap = 128 * 1024 * 1024
    return int(max(cap - 24 * 1024 * 1024, cap // 2))


# ------------------------------ end-to-end forward --------------------------------

@functools.partial(jax.jit, static_argnames=("out_features",))
def _mlp_forward_impl(prepared, x, out_features):
    batch, k_in = x.shape
    hidden = prepared["hidden"]
    n_hidden = len(hidden)
    w_out, b_out = prepared["w_out"], prepared["b_out"]
    outp = w_out.shape[1]
    x_itemsize = jnp.dtype(x.dtype).itemsize

    # Resident (single-buffered) parameter footprint and widest activation.
    weight_bytes = w_out.size * 2 + b_out.size * 4
    max_feat = max(k_in, outp)
    for (w, ss) in hidden:
        weight_bytes += w.size * 2 + ss.size * 4
        max_feat = max(max_feat, w.shape[1])

    vmem_limit = _vmem_limit_bytes()

    def step_bytes(tm):
        x_tile = tm * k_in * x_itemsize * 2   # input tile, double-buffered
        o_tile = tm * outp * 2 * 2            # bf16 output tile, double-buffered
        act = tm * max_feat * 16              # f32 acc + f32 epilogue + bf16 h (+ slack)
        return x_tile + o_tile + act

    if weight_bytes + step_bytes(_SUB) > vmem_limit:
        # TODO(synk): streamed / K-tiled weight path for this case (see header note).
        raise NotImplementedError(
            f"resident weights ({weight_bytes} B) overflow the VMEM budget ({vmem_limit} B)")

    # Batch tiling: >=2 grid steps whenever batch >= 32 so the "parallel" axis shards across
    # both v7x TensorCores; within that, pick the largest tile that fits the VMEM budget.
    bp0 = _round_up(batch, _SUB)
    min_tiles = 2 if bp0 >= 2 * _SUB else 1
    tm_cap = _round_up(_cdiv(batch, min_tiles), _SUB)
    tm = _SUB
    for cand in (16, 32, 64, 128, 256, 512, 1024):
        if cand <= tm_cap and weight_bytes + step_bytes(cand) <= vmem_limit:
            tm = cand
    bp = _round_up(batch, tm)

    # Batch-only pad (no feature pad, no wrapper-side dtype cast).
    x_in = x if bp == batch else jnp.pad(x, ((0, bp - batch), (0, 0)))

    def _invariant(shape):
        # Grid-invariant operand: constant index_map => fetched once; single-buffered so it
        # does not cost 2x its size in VMEM.
        return pl.BlockSpec(shape, lambda i: (0,) * len(shape),
                            pipeline_mode=pl.Buffered(1))

    in_specs = [pl.BlockSpec((tm, k_in), lambda i: (i, 0))]
    args = [x_in]
    flops = 0
    bytes_accessed = x_in.size * x_itemsize + bp * outp * 2
    for (w, ss) in hidden:
        in_specs += [_invariant(w.shape), _invariant(ss.shape)]
        args += [w, ss]
        flops += 2 * bp * w.shape[0] * w.shape[1]
        bytes_accessed += w.size * 2 + ss.size * 4
    in_specs += [_invariant(w_out.shape), _invariant(b_out.shape)]
    args += [w_out, b_out]
    flops += 2 * bp * w_out.shape[0] * outp
    bytes_accessed += w_out.size * 2 + b_out.size * 4

    out_p = pl.pallas_call(
        _make_mlp_kernel(n_hidden),
        out_shape=jax.ShapeDtypeStruct((bp, outp), jnp.bfloat16),
        grid=(bp // tm,),
        in_specs=in_specs,
        out_specs=pl.BlockSpec((tm, outp), lambda i: (i, 0)),
        compiler_params=pltpu.CompilerParams(
            dimension_semantics=("parallel",),        # megacore-shard the batch tiles
            vmem_limit_bytes=int(vmem_limit),
        ),
        cost_estimate=pl.CostEstimate(
            flops=int(flops), transcendentals=0, bytes_accessed=int(bytes_accessed)),
    )(*args)

    # Caller-facing dtype stays f32 (matches the PyTorch module); the cast fuses into the
    # un-pad slice, while the kernel's HBM writeback stays bf16 (half the store bytes).
    return out_p[:batch, :out_features].astype(jnp.float32)


def mlp_forward(prepared, x, output_size):
    """Eval-mode MLP forward; the entire layer stack runs inside one Pallas kernel."""
    return _mlp_forward_impl(prepared, x, output_size)


# ----------------------------------- reference ------------------------------------

def _reference_forward(params, x, eps=1e-5):
    n_hidden = len(params) - 1
    h = x
    for i in range(n_hidden):
        p = params[i]
        y = h @ p["w"] + p["b"]
        y = (y - p["bn_mean"]) / jnp.sqrt(p["bn_var"] + eps) * p["bn_weight"] + p["bn_bias"]
        h = jnp.maximum(y, 0.0)
    p = params[-1]
    return h @ p["w"] + p["b"]


# ------------------------------------- demo ---------------------------------------

if __name__ == "__main__":
    input_size = 16
    hidden_size_list = [32, 32]
    output_size = 8
    batch = 8

    key = jax.random.PRNGKey(0)
    key_params, key_x = jax.random.split(key)

    params = init_mlp_params(key_params, input_size, hidden_size_list, output_size)
    prepared = prepare_mlp_params(params)
    x = jax.random.normal(key_x, (batch, input_size), jnp.float32)

    out = mlp_forward(prepared, x, output_size)
    out = jax.block_until_ready(out)
    assert out.shape == (batch, output_size), out.shape

    ref = _reference_forward(params, x)
    assert jnp.allclose(out, ref, rtol=5e-2, atol=5e-2), float(jnp.max(jnp.abs(out - ref)))

    print("KERNEL_OK")
</pallas_src>

<mosaic_0001>
module attributes {stable_mosaic.version = 11 : i64} {
  func.func @kernel(%arg0: i32, %arg1: memref<16x16xf32, #tpu.memory_space<vmem>>, %arg2: memref<16x128xbf16, #tpu.memory_space<vmem>>, %arg3: memref<2x128xf32, #tpu.memory_space<vmem>>, %arg4: memref<128x128xbf16, #tpu.memory_space<vmem>>, %arg5: memref<2x128xf32, #tpu.memory_space<vmem>>, %arg6: memref<128x128xbf16, #tpu.memory_space<vmem>>, %arg7: memref<1x128xf32, #tpu.memory_space<vmem>>, %arg8: memref<16x128xbf16, #tpu.memory_space<vmem>>) attributes {dimension_semantics = [#tpu.dimension_semantics<parallel>], iteration_bounds = array<i64: 1>, scalar_prefetch = 0 : i64, scratch_operands = 0 : i64, tpu.core_type = #tpu.core_type<tc>, window_params = [{transform_indices = @transform_0, window_bounds = array<i64: 16, 16>}, {pipeline_mode = #tpu.pipeline_mode<synchronous>, transform_indices = @transform_1, window_bounds = array<i64: 16, 128>}, {pipeline_mode = #tpu.pipeline_mode<synchronous>, transform_indices = @transform_2, window_bounds = array<i64: 2, 128>}, {pipeline_mode = #tpu.pipeline_mode<synchronous>, transform_indices = @transform_3, window_bounds = array<i64: 128, 128>}, {pipeline_mode = #tpu.pipeline_mode<synchronous>, transform_indices = @transform_4, window_bounds = array<i64: 2, 128>}, {pipeline_mode = #tpu.pipeline_mode<synchronous>, transform_indices = @transform_5, window_bounds = array<i64: 128, 128>}, {pipeline_mode = #tpu.pipeline_mode<synchronous>, transform_indices = @transform_6, window_bounds = array<i64: 1, 128>}, {transform_indices = @transform_7, window_bounds = array<i64: 16, 128>}]} {
    %c0 = arith.constant 0 : index
    %c0_0 = arith.constant 0 : index
    %0 = vector.load %arg1[%c0, %c0_0] : memref<16x16xf32, #tpu.memory_space<vmem>>, vector<16x16xf32>
    %1 = arith.truncf %0 : vector<16x16xf32> to vector<16x16xbf16>
    %c0_1 = arith.constant 0 : index
    %c0_2 = arith.constant 0 : index
    %2 = vector.load %arg2[%c0_1, %c0_2] : memref<16x128xbf16, #tpu.memory_space<vmem>>, vector<16x128xbf16>
    %cst = arith.constant dense<0.000000e+00> : vector<16x128xf32>
    %3 = tpu.matmul %1, %2, %cst {dimension_numbers = #tpu.dot_dimension_numbers<[1], [0], [0], [1], [0, 0, 1, 1], [], []>} : vector<16x16xbf16>, vector<16x128xbf16>, vector<16x128xf32> -> vector<16x128xf32>
    %c0_3 = arith.constant 0 : index
    %c0_4 = arith.constant 0 : index
    %4 = vector.load %arg3[%c0_3, %c0_4] : memref<2x128xf32, #tpu.memory_space<vmem>>, vector<2x128xf32>
    %5 = vector.extract_strided_slice %4 {offsets = [0, 0], sizes = [1, 128], strides = [1, 1]} : vector<2x128xf32> to vector<1x128xf32>
    %6 = vector.broadcast %5 : vector<1x128xf32> to vector<16x128xf32>
    %7 = arith.mulf %3, %6 : vector<16x128xf32>
    %8 = vector.extract_strided_slice %4 {offsets = [1, 0], sizes = [1, 128], strides = [1, 1]} : vector<2x128xf32> to vector<1x128xf32>
    %9 = vector.broadcast %8 : vector<1x128xf32> to vector<16x128xf32>
    %10 = arith.addf %7, %9 : vector<16x128xf32>
    %cst_5 = arith.constant 0.000000e+00 : f32
    %11 = vector.broadcast %cst_5 : f32 to vector<16x128xf32>
    %12 = arith.maximumf %10, %11 : vector<16x128xf32>
    %13 = arith.truncf %12 : vector<16x128xf32> to vector<16x128xbf16>
    %c0_6 = arith.constant 0 : index
    %c0_7 = arith.constant 0 : index
    %14 = vector.load %arg4[%c0_6, %c0_7] : memref<128x128xbf16, #tpu.memory_space<vmem>>, vector<128x128xbf16>
    %cst_8 = arith.constant dense<0.000000e+00> : vector<16x128xf32>
    %15 = tpu.matmul %13, %14, %cst_8 {dimension_numbers = #tpu.dot_dimension_numbers<[1], [0], [0], [1], [0, 0, 1, 1], [], []>} : vector<16x128xbf16>, vector<128x128xbf16>, vector<16x128xf32> -> vector<16x128xf32>
    %c0_9 = arith.constant 0 : index
    %c0_10 = arith.constant 0 : index
    %16 = vector.load %arg5[%c0_9, %c0_10] : memref<2x128xf32, #tpu.memory_space<vmem>>, vector<2x128xf32>
    %17 = vector.extract_strided_slice %16 {offsets = [0, 0], sizes = [1, 128], strides = [1, 1]} : vector<2x128xf32> to vector<1x128xf32>
    %18 = vector.broadcast %17 : vector<1x128xf32> to vector<16x128xf32>
    %19 = arith.mulf %15, %18 : vector<16x128xf32>
    %20 = vector.extract_strided_slice %16 {offsets = [1, 0], sizes = [1, 128], strides = [1, 1]} : vector<2x128xf32> to vector<1x128xf32>
    %21 = vector.broadcast %20 : vector<1x128xf32> to vector<16x128xf32>
    %22 = arith.addf %19, %21 : vector<16x128xf32>
    %cst_11 = arith.constant 0.000000e+00 : f32
    %23 = vector.broadcast %cst_11 : f32 to vector<16x128xf32>
    %24 = arith.maximumf %22, %23 : vector<16x128xf32>
    %25 = arith.truncf %24 : vector<16x128xf32> to vector<16x128xbf16>
    %c0_12 = arith.constant 0 : index
    %c0_13 = arith.constant 0 : index
    %26 = vector.load %arg6[%c0_12, %c0_13] : memref<128x128xbf16, #tpu.memory_space<vmem>>, vector<128x128xbf16>
    %cst_14 = arith.constant dense<0.000000e+00> : vector<16x128xf32>
    %27 = tpu.matmul %25, %26, %cst_14 {dimension_numbers = #tpu.dot_dimension_numbers<[1], [0], [0], [1], [0, 0, 1, 1], [], []>} : vector<16x128xbf16>, vector<128x128xbf16>, vector<16x128xf32> -> vector<16x128xf32>
    %c0_15 = arith.constant 0 : index
    %c0_16 = arith.constant 0 : index
    %28 = vector.load %arg7[%c0_15, %c0_16] : memref<1x128xf32, #tpu.memory_space<vmem>>, vector<1x128xf32>
    %29 = vector.broadcast %28 : vector<1x128xf32> to vector<16x128xf32>
    %30 = arith.addf %27, %29 : vector<16x128xf32>
    %31 = arith.truncf %30 : vector<16x128xf32> to vector<16x128xbf16>
    %c0_17 = arith.constant 0 : index
    %c0_18 = arith.constant 0 : index
    %32 = vector.load %arg8[%c0_17, %c0_18] : memref<16x128xbf16, #tpu.memory_space<vmem>>, vector<16x128xbf16>
    tpu.vector_store %arg8[%c0_17, %c0_18], %31 {strides = array<i32>} : memref<16x128xbf16, #tpu.memory_space<vmem>>, vector<16x128xbf16>,
    return
  }
  func.func @transform_0(%arg0: i32) -> (i32, i32) {
    %c0_i32 = arith.constant 0 : i32
    %c0_i32_0 = arith.constant 0 : i32
    return %arg0, %c0_i32 : i32, i32
  }
  func.func @transform_1(%arg0: i32) -> (i32, i32) {
    %c0_i32 = arith.constant 0 : i32
    %c0_i32_0 = arith.constant 0 : i32
    %c0_i32_1 = arith.constant 0 : i32
    return %c0_i32, %c0_i32_0 : i32, i32
  }
  func.func @transform_2(%arg0: i32) -> (i32, i32) {
    %c0_i32 = arith.constant 0 : i32
    %c0_i32_0 = arith.constant 0 : i32
    %c0_i32_1 = arith.constant 0 : i32
    return %c0_i32, %c0_i32_0 : i32, i32
  }
  func.func @transform_3(%arg0: i32) -> (i32, i32) {
    %c0_i32 = arith.constant 0 : i32
    %c0_i32_0 = arith.constant 0 : i32
    %c0_i32_1 = arith.constant 0 : i32
    return %c0_i32, %c0_i32_0 : i32, i32
  }
  func.func @transform_4(%arg0: i32) -> (i32, i32) {
    %c0_i32 = arith.constant 0 : i32
    %c0_i32_0 = arith.constant 0 : i32
    %c0_i32_1 = arith.constant 0 : i32
    return %c0_i32, %c0_i32_0 : i32, i32
  }
  func.func @transform_5(%arg0: i32) -> (i32, i32) {
    %c0_i32 = arith.constant 0 : i32
    %c0_i32_0 = arith.constant 0 : i32
    %c0_i32_1 = arith.constant 0 : i32
    return %c0_i32, %c0_i32_0 : i32, i32
  }
  func.func @transform_6(%arg0: i32) -> (i32, i32) {
    %c0_i32 = arith.constant 0 : i32
    %c0_i32_0 = arith.constant 0 : i32
    %c0_i32_1 = arith.constant 0 : i32
    return %c0_i32, %c0_i32_0 : i32, i32
  }
  func.func @transform_7(%arg0: i32) -> (i32, i32) {
    %c0_i32 = arith.constant 0 : i32
    %c0_i32_0 = arith.constant 0 : i32
    return %arg0, %c0_i32 : i32, i32
  }
}

</mosaic_0001>

<bundles_post_ra>
// kernel: _mlp_forward_impl.1
= control target key start
LH: loop header
LB: loop body
LE: loop exit
PB: predicated region body
PF: predicated region fallthrough
CT: control target
= control target key end

     0   :  { %12 = vsyncpa [#allocation3], 0  ;;  %s948_s0 = inlined_call_operand.hbm [shape: f32[16,16], index: 0, kind: input, shape index: {}]   ;;  %s949_s1 = inlined_call_operand.hbm [shape: bf16[16,128], index: 1, kind: input, shape index: {}]   ;;  %s950_s2 = inlined_call_operand.hbm [shape: f32[2,128], index: 2, kind: input, shape index: {}]   ;;  %s951_s3 = inlined_call_operand.hbm [shape: bf16[128,128], index: 3, kind: input, shape index: {}]   ;;  %s952_s4 = inlined_call_operand.hbm [shape: f32[2,128], index: 4, kind: input, shape index: {}]   ;;  %s953_s5 = inlined_call_operand.hbm [shape: bf16[128,128], index: 5, kind: input, shape index: {}]   ;;  %s954_s6 = inlined_call_operand.hbm [shape: f32[1,128], index: 6, kind: input, shape index: {}]   ;;  %s955_s7 = inlined_call_operand.hbm [shape: bf16[16,128], index: 7, kind: output, shape index: {}]  }
   0x1   :  { %13 = vsyncpa [#allocation6], 0 }
   0x2   :  { %14 = vsyncpa [#allocation9], 0 }
   0x3   :  { %15 = vsyncpa [#allocation12], 0 }
   0x4   :  { %16 = vsyncpa [#allocation4], 0  ;;  %s763_s24 = smov [#allocation5]   ;;  %s577_s28 = scalar_lea.hbm %s949_s1, 128 }
   0x5   :  { %s34_s25 = sshll.u32 %s763_s24, 4  ;;  %p578_p0 = scmp.ne.s32.totalorder %s949_s1, %s577_s28  ;;  %s35_s25 = int_to_ptr.vmem [resolvable:$true] %s34_s25 }
   0x6   :  { %p581_p1 = scmp.lt.u32.totalorder %s577_s28, %s949_s1 }
   0x8   :  { %p583_p2 = pnand %p581_p1, %p578_p0 }
   0xa   :  { %586 = shalt.err (!%p583_p2)
}
   0xb   :  { %s587_s10 = scalar_lea.vmem %s35_s25, 128  ;;  %p592_p4 = scmp.lt.s32.totalorder %s35_s25, %s35_s25 }
   0xc   :  { %p588_p3 = scmp.ne.s32.totalorder %s35_s25, %s587_s10  ;;  %p593_p5 = scmp.lt.s32.totalorder %s587_s10, %s587_s10 }
   0xe   :  { %p594_p6 = por %p593_p5, %p592_p4 }
  0x10   :  { %p595_p7 = pnand %p594_p6, %p588_p3 }
  0x12   :  { %598 = shalt.err (!%p595_p7)
}
  0x13   :  { %s764_s11 = smov 64   ;;  %s765_s12 = smov 4  }
  0x14   :  { %40 = dma.hbm_to_vmem [thread:$0]  %s949_s1, 128, %s35_s25, [#allocation6], %s764_s11, %s764_s11, %s765_s12  }
  0x15   :  { %s766_s15 = smov [#allocation8]   ;;  %s767_s17 = smov [#allocation11]  }
  0x16   :  { %s56_s16 = sshll.u32 %s766_s15, 4  ;;  %s78_s18 = sshll.u32 %s767_s17, 4  ;;  %s57_s16 = int_to_ptr.vmem [resolvable:$true] %s56_s16  ;;  %s79_s18 = int_to_ptr.vmem [resolvable:$true] %s78_s18 }
  0x17   :  { %s599_s21 = scalar_lea.hbm %s951_s3, 1024 }
  0x18   :  { %p600_p8 = scmp.ne.s32.totalorder %s951_s3, %s599_s21  ;;  %p603_p9 = scmp.lt.u32.totalorder %s599_s21, %s951_s3 }
  0x1a   :  { %p605_p10 = pnand %p603_p9, %p600_p8 }
  0x1c   :  { %608 = shalt.err (!%p605_p10)
}
  0x1d   :  { %s609_s1 = scalar_lea.vmem %s57_s16, 1024  ;;  %p614_p12 = scmp.lt.s32.totalorder %s57_s16, %s57_s16 }
  0x1e   :  { %p610_p11 = scmp.ne.s32.totalorder %s57_s16, %s609_s1  ;;  %p615_p13 = scmp.lt.s32.totalorder %s609_s1, %s609_s1 }
  0x20   :  { %p616_p0 = por %p615_p13, %p614_p12 }
  0x22   :  { %p617_p1 = pnand %p616_p0, %p610_p11 }
  0x24   :  { %620 = shalt.err (!%p617_p1)
}
  0x25   :  { %62 = dma.hbm_to_vmem [thread:$0]  %s951_s3, 1024, %s57_s16, [#allocation9], %s764_s11, %s764_s11, %s765_s12  }
  0x26   :  { %s621_s30 = scalar_lea.hbm %s953_s5, 1024 }
  0x27   :  { %p622_p2 = scmp.ne.s32.totalorder %s953_s5, %s621_s30  ;;  %p625_p3 = scmp.lt.u32.totalorder %s621_s30, %s953_s5 }
  0x29   :  { %p627_p4 = pnand %p625_p3, %p622_p2 }
  0x2b   :  { %630 = shalt.err (!%p627_p4)
}
  0x2c   :  { %s631_s14 = scalar_lea.vmem %s79_s18, 1024  ;;  %p636_p6 = scmp.lt.s32.totalorder %s79_s18, %s79_s18 }
  0x2d   :  { %p632_p5 = scmp.ne.s32.totalorder %s79_s18, %s631_s14  ;;  %p637_p7 = scmp.lt.s32.totalorder %s631_s14, %s631_s14 }
  0x2f   :  { %p638_p8 = por %p637_p7, %p636_p6 }
  0x31   :  { %p639_p9 = pnand %p638_p8, %p632_p5 }
  0x33   :  { %642 = shalt.err (!%p639_p9)
}
  0x34   :  { %84 = dma.hbm_to_vmem [thread:$0]  %s953_s5, 1024, %s79_s18, [#allocation12], %s764_s11, %s764_s11, %s765_s12  }
  0x35   :  { %s768_s16 = smov [#allocation2]   ;;  %s643_s21 = scalar_lea.hbm %s948_s0, 256 }
  0x36   :  { %s22_s17 = sshll.u32 %s768_s16, 4  ;;  %p644_p10 = scmp.ne.s32.totalorder %s948_s0, %s643_s21  ;;  %s23_s17 = int_to_ptr.vmem [resolvable:$true] %s22_s17 }
  0x37   :  { %p647_p11 = scmp.lt.u32.totalorder %s643_s21, %s948_s0 }
  0x39   :  { %p649_p12 = pnand %p647_p11, %p644_p10 }
  0x3b   :  { %652 = shalt.err (!%p649_p12)
}
  0x3c   :  { %s653_s1 = scalar_lea.vmem %s23_s17, 256  ;;  %p658_p0 = scmp.lt.s32.totalorder %s23_s17, %s23_s17 }
  0x3d   :  { %p654_p13 = scmp.ne.s32.totalorder %s23_s17, %s653_s1  ;;  %p659_p1 = scmp.lt.s32.totalorder %s653_s1, %s653_s1 }
  0x3f   :  { %p660_p2 = por %p659_p1, %p658_p0 }
  0x41   :  { %p661_p3 = pnand %p660_p2, %p654_p13 }
  0x43   :  { %664 = shalt.err (!%p661_p3)
}
  0x44   :  { %s769_s5 = smov 128   ;;  %s770_s18 = smov 8  }
  0x45   :  { %28 = dma.hbm_to_vmem [thread:$0]  %s948_s0, 256, %s23_s17, [#allocation3], %s769_s5, %s769_s5, %s770_s18  }
  0x46   :  { %s771_s28 = smov [#allocation7]   ;;  %s772_s30 = smov [#allocation10]  }
  0x47   :  { %s47_s29 = sshll.u32 %s771_s28, 4  ;;  %s69_s8 = sshll.u32 %s772_s30, 4  ;;  %s48_s29 = int_to_ptr.vmem [resolvable:$true] %s47_s29  ;;  %s70_s8 = int_to_ptr.vmem [resolvable:$true] %s69_s8 }
  0x48   :  { %s665_s13 = scalar_lea.hbm %s950_s2, 32 }
  0x49   :  { %p666_p4 = scmp.ne.s32.totalorder %s950_s2, %s665_s13  ;;  %p669_p5 = scmp.lt.u32.totalorder %s665_s13, %s950_s2 }
  0x4b   :  { %p671_p6 = pnand %p669_p5, %p666_p4 }
  0x4d   :  { %674 = shalt.err (!%p671_p6)
}
  0x4e   :  { %s675_s0 = scalar_lea.vmem %s48_s29, 32  ;;  %p680_p8 = scmp.lt.s32.totalorder %s48_s29, %s48_s29 }
  0x4f   :  { %p676_p7 = scmp.ne.s32.totalorder %s48_s29, %s675_s0  ;;  %p681_p9 = scmp.lt.s32.totalorder %s675_s0, %s675_s0 }
  0x51   :  { %p682_p10 = por %p681_p9, %p680_p8 }
  0x53   :  { %p683_p11 = pnand %p682_p10, %p676_p7 }
  0x55   :  { %686 = shalt.err (!%p683_p11)
}
  0x56   :  { %50 = dma.hbm_to_vmem [thread:$0]  %s950_s2, 32, %s48_s29, [#allocation6]  }
  0x57   :  { %s687_s22 = scalar_lea.hbm %s952_s4, 32 }
  0x58   :  { %p688_p12 = scmp.ne.s32.totalorder %s952_s4, %s687_s22  ;;  %p691_p13 = scmp.lt.u32.totalorder %s687_s22, %s952_s4 }
  0x5a   :  { %p693_p0 = pnand %p691_p13, %p688_p12 }
  0x5c   :  { %696 = shalt.err (!%p693_p0)
}
  0x5d   :  { %s697_s5 = scalar_lea.vmem %s70_s8, 32  ;;  %p702_p2 = scmp.lt.s32.totalorder %s70_s8, %s70_s8 }
  0x5e   :  { %p698_p1 = scmp.ne.s32.totalorder %s70_s8, %s697_s5  ;;  %p703_p3 = scmp.lt.s32.totalorder %s697_s5, %s697_s5 }
  0x60   :  { %p704_p4 = por %p703_p3, %p702_p2 }
  0x62   :  { %p705_p5 = pnand %p704_p4, %p698_p1 }
  0x64   :  { %708 = shalt.err (!%p705_p5)
}
  0x65   :  { %72 = dma.hbm_to_vmem [thread:$0]  %s952_s4, 32, %s70_s8, [#allocation9]  }
  0x66   :  { %s773_s25 = smov [#allocation13]   ;;  %s709_s30 = scalar_lea.hbm %s954_s6, 16 }
  0x67   :  { %s91_s27 = sshll.u32 %s773_s25, 4  ;;  %p710_p6 = scmp.ne.s32.totalorder %s954_s6, %s709_s30  ;;  %s92_s27 = int_to_ptr.vmem [resolvable:$true] %s91_s27 }
  0x68   :  { %p713_p7 = scmp.lt.u32.totalorder %s709_s30, %s954_s6 }
  0x6a   :  { %p715_p8 = pnand %p713_p7, %p710_p6 }
  0x6c   :  { %718 = shalt.err (!%p715_p8)
}
  0x6d   :  { %s719_s3 = scalar_lea.vmem %s92_s27, 16  ;;  %s723_s4 = scalar_lea.vmem %s92_s27, 32 }
  0x6e   :  { %p720_p9 = scmp.ne.s32.totalorder %s92_s27, %s719_s3  ;;  %p724_p10 = scmp.lt.s32.totalorder %s92_s27, %s92_s27 }
  0x6f   :  { %p725_p11 = scmp.lt.s32.totalorder %s723_s4, %s719_s3 }
  0x71   :  { %p726_p12 = por %p725_p11, %p724_p10 }
  0x73   :  { %p727_p13 = pnand %p726_p12, %p720_p9 }
  0x75   :  { %730 = shalt.err (!%p727_p13)
}
  0x76   :  { %94 = dma.hbm_to_vmem [thread:$0]  %s954_s6, 16, %s92_s27, [#allocation12]  }
  0x77   :  { %753 = dma.done.wait [#allocation3], 256  }
  0x78   :  { %754 = vsyncadd [#allocation3], 4294967040 }
  0x79   :  { %755 = dma.done.wait [#allocation6], 160  }
  0x7a   :  { %756 = vsyncadd [#allocation6], 4294967136 }
  0x7b   :  { %757 = dma.done.wait [#allocation9], 1056  }
  0x7c   :  { %758 = vsyncadd [#allocation9], 4294966240 }
  0x7d   :  { %759 = dma.done.wait [#allocation12], 1040  }
  0x7e   :  { %760 = vsyncadd [#allocation12], 4294966256  ;;  %v774_v0 = vmov 0.0   ;;  %vm775_vm0 = vmmov 0   ;;  %v560_v1 = vld [vmem:[#allocation5] sm:$0xff]   ;;  %v117_v2 = vld [vmem:[#allocation2] sm:$0xff]  ;;  %v174_v18 = vlaneseq }
  0x7f   :  { %500 = vmatprep.subr.bf16.mxu0 %v774_v0  ;;  %502 = vmatprep.mubr.msk.bf16.mxu0 %vm775_vm0, %v774_v0  ;;  %v118_v3 = vld [vmem:[#allocation2 + $0x8] sm:$0xff]  ;;  %vm128_vm1 = vcmask 130048   ;;  %v561_v5 = vld [vmem:[#allocation8] sm:$0xff]   ;;  %v564_v8 = vld [vmem:[#allocation8 + $0x18] sm:$0xff]   ;;  %s776_s6 = smov [#allocation14]  }
  0x80   :  { %506 = vmatprep.subr.bf16.mxu1 %v774_v0  ;;  %522 = vmatprep.mubr.msk.bf16.mxu1 %vm775_vm0, %v774_v0  ;;  %v119_v4 = vpack.c.bf16 %v118_v3, %v117_v2  ;;  %v562_v6 = vld [vmem:[#allocation8 + $0x8] sm:$0xff]   ;;  %v563_v7 = vld [vmem:[#allocation8 + $0x10] sm:$0xff]   ;;  %v565_v9 = vld [vmem:[#allocation8 + $0x20] sm:$0xff]   ;;  %v175_v19 = vshrl.u32 %v174_v18, 7  ;;  %s437_s16 = sshll.u32 %s776_s6, 4  ;;  %s438_s16 = int_to_ptr.vmem [resolvable:$true] %s437_s16 }
  0x81   :  { %501 = vmatpush3.bf16.msra.mxu0 %v560_v1  ;;  %507 = vmatpush3.bf16.msra.mxu1 %v561_v5  ;;  %v566_v10 = vld [vmem:[#allocation8 + $0x28] sm:$0xff]   ;;  %v567_v11 = vld [vmem:[#allocation8 + $0x30] sm:$0xff]   ;;  %v568_v12 = vld [vmem:[#allocation8 + $0x38] sm:$0xff]   ;;  %s731_s0 = scalar_lea.vmem %s438_s16, 128  ;;  %p736_p1 = scmp.lt.s32.totalorder %s438_s16, %s438_s16 }
  0x82   :  { %526 = vmatprep.subr.bf16.mxu0 %v774_v0  ;;  %508 = vmatprep.subr.bf16.mxu1 %v774_v0  ;;  %v569_v13 = vld [vmem:[#allocation11] sm:$0xff]   ;;  %v570_v14 = vld [vmem:[#allocation11 + $0x8] sm:$0xff]   ;;  %v571_v15 = vld [vmem:[#allocation11 + $0x10] sm:$0xff]   ;;  %v176_v20 = vsub.s32 0, %v175_v19  ;;  %v182_v22 = vsub.s32 1, %v175_v19  ;;  %p732_p0 = scmp.ne.s32.totalorder %s438_s16, %s731_s0  ;;  %p737_p2 = scmp.lt.s32.totalorder %s731_s0, %s731_s0 }
  0x83   :  { %v572_v16 = vld [vmem:[#allocation11 + $0x18] sm:$0xff]   ;;  %v573_v17 = vld [vmem:[#allocation11 + $0x20] sm:$0xff]   ;;  %v574_v36 = vld [vmem:[#allocation11 + $0x28] sm:$0xff]  }
  0x84   :  { %503 = vmatmul.mubr.msk.bf16.vlgmr.msra.gmra.mrb[0].mxu0 %vm128_vm1, %v119_v4  ;;  %v173_v21 = vld [vmem:[#allocation7] sm:$0x3]  ;;  %v575_v37 = vld [vmem:[#allocation11 + $0x30] sm:$0xff]   ;;  %v294_v39 = vld [vmem:[#allocation10] sm:$0x3]  ;;  %p738_p3 = por %p737_p2, %p736_p1 }
  0x85   :  { %542 = vmatprep.mubr.msk.bf16.mxu0 %vm775_vm0, %v774_v0  ;;  %509 = vmatpush3.bf16.msra.mxu1 %v562_v6  ;;  %v177_v23 = vrot.slane %v173_v21, %v176_v20  ;;  %v183_v24 = vrot.slane %v173_v21, %v182_v22  ;;  %v576_v38 = vld [vmem:[#allocation11 + $0x38] sm:$0xff]   ;;  %v298_v40 = vrot.slane %v294_v39, %v176_v20  ;;  %v462_v53 = vld [vmem:[#allocation13] ss:$0 sm:$0xff] }
  0x86   :  { %510 = vmatprep.subr.bf16.mxu1 %v774_v0  ;;  %527 = vmatpush3.bf16.msra.mxu0 %v569_v13  ;;  %v304_v41 = vrot.slane %v294_v39, %v182_v22  ;;  %p739_p4 = pnand %p738_p3, %p732_p0 }
  0x87   :  { %528 = vmatprep.subr.bf16.mxu0 %v774_v0 }
  0x89   :  { %511 = vmatpush3.bf16.msra.mxu1 %v563_v7 }
  0x8a   :  { %512 = vmatprep.subr.bf16.mxu1 %v774_v0  ;;  %529 = vmatpush3.bf16.msra.mxu0 %v570_v14 }
  0x8b   :  { %530 = vmatprep.subr.bf16.mxu0 %v774_v0 }
  0x8d   :  { %513 = vmatpush3.bf16.msra.mxu1 %v564_v8 }
  0x8e   :  { %514 = vmatprep.subr.bf16.mxu1 %v774_v0  ;;  %531 = vmatpush3.bf16.msra.mxu0 %v571_v15 }
  0x8f   :  { %532 = vmatprep.subr.bf16.mxu0 %v774_v0 }
  0x91   :  { %515 = vmatpush3.bf16.msra.mxu1 %v565_v9 }
  0x92   :  { %516 = vmatprep.subr.bf16.mxu1 %v774_v0  ;;  %533 = vmatpush3.bf16.msra.mxu0 %v572_v16 }
  0x93   :  { %534 = vmatprep.subr.bf16.mxu0 %v774_v0 }
  0x95   :  { %517 = vmatpush3.bf16.msra.mxu1 %v566_v10 }
  0x96   :  { %518 = vmatprep.subr.bf16.mxu1 %v774_v0  ;;  %535 = vmatpush3.bf16.msra.mxu0 %v573_v17 }
  0x97   :  { %536 = vmatprep.subr.bf16.mxu0 %v774_v0 }
  0x99   :  { %519 = vmatpush3.bf16.msra.mxu1 %v567_v11 }
  0x9a   :  { %520 = vmatprep.subr.bf16.mxu1 %v774_v0  ;;  %537 = vmatpush3.bf16.msra.mxu0 %v574_v36 }
  0x9b   :  { %538 = vmatprep.subr.bf16.mxu0 %v774_v0 }
  0x9d   :  { %521 = vmatpush3.bf16.msra.mxu1 %v568_v12 }
  0x9e   :  { %539 = vmatpush3.bf16.msra.mxu0 %v575_v37 }
  0x9f   :  { %540 = vmatprep.subr.bf16.mxu0 %v774_v0 }
  0xa2   :  { %541 = vmatpush3.bf16.msra.mxu0 %v576_v38 }
 0x157   :  { %v166_v25 = vpop.f32.mrb[0].mxu0 }
 0x158   :  { %v178_v26 = vmul.f32 %v177_v23, %v166_v25  ;;  %v504_v27 = vpop.f32.mrb[1].mxu0 }
 0x159   :  { %v169_v28 = vpop.f32.mrb[2].mxu0 }
 0x15a   :  { %v184_v29 = vadd.f32 %v183_v24, %v178_v26  ;;  %v179_v30 = vmul.f32 %v177_v23, %v169_v28  ;;  %v505_v31 = vpop.f32.mrb[3].mxu0 }
 0x15c   :  { %v185_v32 = vadd.f32 %v183_v24, %v179_v30  ;;  %v186_v33 = vmax.f32 %v184_v29, 0.0 }
 0x15e   :  { %v187_v34 = vmax.f32 %v185_v32, 0.0 }
 0x160   :  { %v188_v35 = vpack.c.bf16 %v187_v34, %v186_v33 }
 0x162   :  { %523 = vmatmul.mubr.bf16.vlgmr.msra.gmra.mrb[0].mxu1 %v188_v35 }
 0x235   :  { %v287_v42 = vpop.f32.mrb[0].mxu1 }
 0x236   :  { %v299_v43 = vmul.f32 %v298_v40, %v287_v42  ;;  %v524_v44 = vpop.f32.mrb[1].mxu1 }
 0x237   :  { %v290_v45 = vpop.f32.mrb[2].mxu1 }
 0x238   :  { %v305_v46 = vadd.f32 %v304_v41, %v299_v43  ;;  %v300_v47 = vmul.f32 %v298_v40, %v290_v45  ;;  %v525_v48 = vpop.f32.mrb[3].mxu1 }
 0x23a   :  { %v306_v49 = vadd.f32 %v304_v41, %v300_v47  ;;  %v307_v50 = vmax.f32 %v305_v46, 0.0 }
 0x23c   :  { %v308_v51 = vmax.f32 %v306_v49, 0.0 }
 0x23e   :  { %v309_v52 = vpack.c.bf16 %v308_v51, %v307_v50 }
 0x240   :  { %543 = vmatmul.mubr.bf16.vlgmr.msra.gmra.mrb[4].mxu0 %v309_v52 }
 0x313   :  { %v415_v54 = vpop.f32.mrb[4].mxu0 }
 0x314   :  { %v544_v55 = vpop.f32.mrb[5].mxu0  ;;  %v416_v57 = vadd.f32 %v462_v53, %v415_v54 }
 0x315   :  { %v418_v56 = vpop.f32.mrb[6].mxu0 }
 0x316   :  { %v419_v58 = vadd.f32 %v462_v53, %v418_v56  ;;  %v545_v59 = vpop.f32.mrb[7].mxu0 }
 0x318   :  { %v478_v60 = vpack.c.bf16 %v419_v58, %v416_v57 }
 0x31a   :  { %479 = vst [vmem:[#allocation14] sm:$0xff] %v478_v60  }
 0x31b   :  { %742 = shalt.err (!%p739_p4)
}
 0x31c   :  { %s743_s20 = scalar_lea.hbm %s955_s7, 128 }
 0x31d   :  { %p744_p5 = scmp.ne.s32.totalorder %s955_s7, %s743_s20  ;;  %p747_p6 = scmp.lt.u32.totalorder %s743_s20, %s955_s7 }
 0x31f   :  { %p749_p7 = pnand %p747_p6, %p744_p5 }
 0x321   :  { %752 = shalt.err (!%p749_p7)
}
 0x322   :  { %443 = dma.vmem_to_hbm [thread:$0]  %s438_s16, 128, %s955_s7, [#allocation4], %s764_s11, %s764_s11, %s765_s12  }
 0x323   :  { %761 = dma.done.wait [#allocation4], 128  }
 0x324   :  { %762 = vsyncadd [#allocation4], 4294967168 }
 0x325   :  { %447 = vsyncpa [#allocation3], 1 }
 0x326   :  { %448 = vsyncpa [#allocation6], 1 }
 0x327   :  { %449 = vsyncpa [#allocation9], 1 }
 0x328   :  { %450 = vsyncpa [#allocation12], 1 }
 0x329   :  { %451 = vsyncpa [#allocation4], 1 }

</bundles_post_ra>
